<compile_context>
chip_gen: v6e
topology: v6e:2x2x1
jax: 0.10.0
libtpu: 0.0.40
codegen_flags: <defaults>
</compile_context>

<pallas_src>
import functools
import math

import jax
import jax.numpy as jnp
from jax.experimental import pallas as pl
from jax.experimental.pallas import tpu as pltpu


# --------------------------------------------------------------------------
# Kernel
# --------------------------------------------------------------------------
def _gates_kernel(wu_ref, xh_ref, b_ref, o_ref, *, activations, rows):
    # One fused MXU matmul for all gates and all instances in this lane slab:
    #   [W0|U0 ; W1|U1 ; ...] (G*rows, K)  @  [x ; hidden] (K, tn)
    # f32 accumulate on the MXU, bias add on the VPU, activation on the EUP.
    pre = jnp.dot(wu_ref[...], xh_ref[...], preferred_element_type=jnp.float32)
    pre = pre + b_ref[...]

    if all(act is activations[0] for act in activations):
        # Homogeneous activations (and the single-gate case): one shot.
        o_ref[...] = activations[0](pre).astype(o_ref.dtype)
    else:
        # Per-gate activation on its (rows, tn) sublane-aligned row block.
        for g, act in enumerate(activations):
            o_ref[pl.ds(g * rows, rows), :] = act(
                pre[g * rows:(g + 1) * rows, :]).astype(o_ref.dtype)


# --------------------------------------------------------------------------
# Tiling heuristic
# --------------------------------------------------------------------------
def _pick_lane_tile(total, rows, m, k, in_itemsize, *, min_grid_steps=1,
                    vmem_budget_bytes=8 * 1024 * 1024):
    """Largest lane tile dividing `total` that is a multiple of `rows` (so
    whole gate instances stay inside one tile -> the lane-tiled bias is
    correct) and of 128 (lane-dense stores), subject to a conservative VMEM
    budget (safe w.r.t. v7x's 64 MiB VMEM / 32 MiB scoped default).

    Bigger tiles -> fewer grid steps; per-step overhead dominates the tiny
    per-step compute at these shapes.  `min_grid_steps=2` keeps work for both
    v7x TensorCores when the problem is large enough.
    """
    def fits(cand):
        stream = 2 * cand * (k * in_itemsize + m * 4)   # double-buffered xh in + f32 out
        resident = m * (k * in_itemsize + cand * 4)     # [W|U] stack + lane-tiled bias
        return stream + resident <= vmem_budget_bytes

    candidates = [c for c in (4096, 2048, 1024, 512, 256, 128)
                  if total % c == 0 and c % rows == 0 and fits(c)]
    for c in candidates:                                # candidates are descending
        if total // c >= min_grid_steps:
            return c
    if candidates:
        return candidates[0]
    # Fallback: block == full array dims is always legal (masked store if <128).
    return total


# --------------------------------------------------------------------------
# Packed-layout core (no per-call transpose passes)
# --------------------------------------------------------------------------
def pack_xh(x, hidden, dtype=None):
    """(B, cols, rows) + (B, rows, rows) -> packed (cols+rows, B*rows).

    This transpose/reshape should happen once per sequence, not per gate call;
    carry the packed layout across timesteps where possible.
    """
    batch, cols, rows = x.shape
    k = cols + rows
    xh = jnp.concatenate([x, hidden], axis=1)                   # (B, K, rows)
    xh = jnp.transpose(xh, (1, 0, 2)).reshape(k, batch * rows)  # (K, B*rows)
    if dtype is not None:
        xh = xh.astype(dtype)
    return xh


def unpack_gate_outputs(out_packed, num_gates, batch, rows):
    """(G*rows, B*rows) -> (G, B, rows, rows)."""
    return out_packed.reshape(num_gates, rows, batch, rows).transpose(0, 2, 1, 3)


def gates_forward_packed(wu, bias, xh, activations, rows, *, min_grid_steps=1):
    """Fused gate forward on the packed layout.

    wu:   (G*rows, K)   stacked [W_g | U_g] (matmul dtype, e.g. f32 or bf16)
    bias: (G*rows, rows) stacked per-gate bias, f32
    xh:   (K, B*rows)   packed [x ; hidden] columns (matmul dtype)
    ->    (G*rows, B*rows) = activation_g(W_g x_b + U_g h_b + bias_g), f32
    """
    m, k = wu.shape
    total = xh.shape[1]
    num_gates = len(activations)
    assert m == num_gates * rows
    assert bias.shape == (m, rows)
    assert xh.shape[0] == k
    assert total % rows == 0

    tn = _pick_lane_tile(total, rows, m, k, jnp.dtype(wu.dtype).itemsize,
                         min_grid_steps=min_grid_steps)
    # Correctness of the lane-tiled bias requires whole instances per tile.
    assert tn % rows == 0, "lane tile must be a multiple of `rows`"
    grid = (total // tn,)

    bias_tiled = jnp.tile(bias.astype(jnp.float32), (1, tn // rows))  # (m, tn)

    return pl.pallas_call(
        functools.partial(_gates_kernel, activations=tuple(activations),
                          rows=rows),
        out_shape=jax.ShapeDtypeStruct((m, total), jnp.float32),
        grid=grid,
        in_specs=[
            pl.BlockSpec((m, k), lambda i: (0, 0)),    # [W|U] stack: VMEM-resident
            pl.BlockSpec((k, tn), lambda i: (0, i)),   # streaming [x;hidden] slab
            pl.BlockSpec((m, tn), lambda i: (0, 0)),   # lane-tiled bias: resident
        ],
        out_specs=pl.BlockSpec((m, tn), lambda i: (0, i)),
        compiler_params=pltpu.CompilerParams(
            dimension_semantics=("parallel",)),
    )(wu, xh, bias_tiled)


# --------------------------------------------------------------------------
# User-facing wrappers
# --------------------------------------------------------------------------
def mat_gru_fused_gates_batched(Ws, Us, biases, x, hidden, activations,
                                matmul_dtype=jnp.float32, min_grid_steps=1):
    """Fused forward of G gate instances that share (x, hidden).

    Ws: (G, rows, cols), Us: (G, rows, rows), biases: (G, rows, rows)
    x:  (B, cols, rows), hidden: (B, rows, rows)
    ->  (G, B, rows, rows)
    """
    num_gates, rows, cols = Ws.shape
    batch = x.shape[0]
    assert len(activations) == num_gates
    assert Us.shape == (num_gates, rows, rows)
    assert biases.shape == (num_gates, rows, rows)
    assert x.shape == (batch, cols, rows)
    assert hidden.shape == (batch, rows, rows)

    # One-time layout plumbing (outside the kernel).
    wu = jnp.concatenate([Ws, Us], axis=2).reshape(num_gates * rows,
                                                   cols + rows)
    wu = wu.astype(matmul_dtype)
    bias = biases.reshape(num_gates * rows, rows)
    xh = pack_xh(x, hidden, dtype=matmul_dtype)

    out = gates_forward_packed(wu, bias, xh, activations, rows,
                               min_grid_steps=min_grid_steps)
    return unpack_gate_outputs(out, num_gates, batch, rows)


def mat_gru_gate_batched(W, U, bias, x, hidden, activation=jax.nn.sigmoid,
                         matmul_dtype=jnp.float32, min_grid_steps=1):
    """Single gate applied to a batch of independent (x, hidden) pairs."""
    return mat_gru_fused_gates_batched(
        W[None], U[None], bias[None], x, hidden, (activation,),
        matmul_dtype=matmul_dtype, min_grid_steps=min_grid_steps)[0]


def mat_gru_gate(W, U, bias, x, hidden, activation=jax.nn.sigmoid):
    """Exact single-instance forward of the PyTorch module.

    Per the perf review, a lone (rows, rows) instance with rows < 128 lanes is
    launch-overhead dominated and store-masked on TPU, so it goes through
    plain XLA; batched callers should use mat_gru_gate_batched (Pallas).
    """
    rows = W.shape[0]
    if rows >= 128:
        return mat_gru_gate_batched(W, U, bias, x[None], hidden[None],
                                    activation)[0]
    return activation(W @ x + U @ hidden + bias)


# --------------------------------------------------------------------------
# Self-test
# --------------------------------------------------------------------------
if __name__ == "__main__":
    rows, cols = 32, 16
    batch = 32   # number of independent graph nodes / timesteps

    key = jax.random.PRNGKey(0)
    k_w, k_u, k_x, k_h = jax.random.split(key, 4)

    # Three gate instances (update / reset / h_tilde), reset_param-style init.
    stdv_w = 1.0 / math.sqrt(cols)
    stdv_u = 1.0 / math.sqrt(rows)
    Ws = jax.random.uniform(k_w, (3, rows, cols), jnp.float32, -stdv_w, stdv_w)
    Us = jax.random.uniform(k_u, (3, rows, rows), jnp.float32, -stdv_u, stdv_u)
    biases = jnp.zeros((3, rows, rows), jnp.float32)
    acts = (jax.nn.sigmoid, jax.nn.sigmoid, jnp.tanh)

    x = jax.random.uniform(k_x, (batch, cols, rows), jnp.float32, -1.0, 1.0)
    hidden = jax.random.uniform(k_h, (batch, rows, rows), jnp.float32, -1.0, 1.0)

    def ref_gate(W, U, b, act):
        return act(jnp.einsum("rc,bcn->brn", W, x)
                   + jnp.einsum("rk,bkn->brn", U, hidden) + b)

    # 1) Single-gate batched Pallas path (the module's forward, batched).
    out1 = jax.block_until_ready(
        mat_gru_gate_batched(Ws[0], Us[0], biases[0], x, hidden,
                             jax.nn.sigmoid))
    ref1 = ref_gate(Ws[0], Us[0], biases[0], jax.nn.sigmoid)
    assert out1.shape == (batch, rows, rows)
    assert jnp.allclose(out1, ref1, atol=1e-5, rtol=1e-5)

    # 2) Fused 3-gate path: one pallas_call, one [x;hidden] DMA for all gates.
    out3 = jax.block_until_ready(
        mat_gru_fused_gates_batched(Ws, Us, biases, x, hidden, acts))
    assert out3.shape == (3, batch, rows, rows)
    for g in range(3):
        assert jnp.allclose(out3[g],
                            ref_gate(Ws[g], Us[g], biases[g], acts[g]),
                            atol=1e-5, rtol=1e-5)

    # 3) bf16 matmul operands (v6e/v7x MXU-native); post-matmul math stays f32.
    out3_bf16 = jax.block_until_ready(
        mat_gru_fused_gates_batched(Ws, Us, biases, x, hidden, acts,
                                    matmul_dtype=jnp.bfloat16))
    for g in range(3):
        assert jnp.allclose(out3_bf16[g],
                            ref_gate(Ws[g], Us[g], biases[g], acts[g]),
                            atol=3e-2)

    # 4) Single-instance path: exactly the original module's forward.
    out_single = jax.block_until_ready(
        mat_gru_gate(Ws[0], Us[0], biases[0], x[0], hidden[0],
                     jax.nn.sigmoid))
    assert out_single.shape == (rows, rows)
    assert jnp.allclose(out_single, ref1[0], atol=1e-5, rtol=1e-5)

    print("KERNEL_OK")
</pallas_src>

<mosaic_0001>
module attributes {stable_mosaic.version = 11 : i64} {
  func.func @_gates_kernel(%arg0: i32, %arg1: memref<32x48xf32, #tpu.memory_space<vmem>>, %arg2: memref<48x1024xf32, #tpu.memory_space<vmem>>, %arg3: memref<32x1024xf32, #tpu.memory_space<vmem>>, %arg4: memref<32x1024xf32, #tpu.memory_space<vmem>>) attributes {dimension_semantics = [#tpu.dimension_semantics<parallel>], iteration_bounds = array<i64: 1>, scalar_prefetch = 0 : i64, scratch_operands = 0 : i64, tpu.core_type = #tpu.core_type<tc>, window_params = [{pipeline_mode = #tpu.pipeline_mode<synchronous>, transform_indices = @transform_0, window_bounds = array<i64: 32, 48>}, {transform_indices = @transform_1, window_bounds = array<i64: 48, 1024>}, {pipeline_mode = #tpu.pipeline_mode<synchronous>, transform_indices = @transform_2, window_bounds = array<i64: 32, 1024>}, {transform_indices = @transform_3, window_bounds = array<i64: 32, 1024>}]} {
    %c0 = arith.constant 0 : index
    %c0_0 = arith.constant 0 : index
    %0 = vector.load %arg1[%c0, %c0_0] : memref<32x48xf32, #tpu.memory_space<vmem>>, vector<32x48xf32>
    %c0_1 = arith.constant 0 : index
    %c0_2 = arith.constant 0 : index
    %1 = vector.load %arg2[%c0_1, %c0_2] : memref<48x1024xf32, #tpu.memory_space<vmem>>, vector<48x1024xf32>
    %cst = arith.constant dense<0.000000e+00> : vector<32x1024xf32>
    %2 = tpu.matmul %0, %1, %cst {dimension_numbers = #tpu.dot_dimension_numbers<[1], [0], [0], [1], [0, 0, 1, 1], [], []>} : vector<32x48xf32>, vector<48x1024xf32>, vector<32x1024xf32> -> vector<32x1024xf32>
    %c0_3 = arith.constant 0 : index
    %c0_4 = arith.constant 0 : index
    %3 = vector.load %arg3[%c0_3, %c0_4] : memref<32x1024xf32, #tpu.memory_space<vmem>>, vector<32x1024xf32>
    %4 = arith.addf %2, %3 : vector<32x1024xf32>
    %5 = arith.negf %4 : vector<32x1024xf32>
    %6 = math.exp %5 : vector<32x1024xf32>
    %cst_5 = arith.constant 1.000000e+00 : f32
    %7 = vector.broadcast %cst_5 : f32 to vector<32x1024xf32>
    %8 = arith.addf %7, %6 : vector<32x1024xf32>
    %9 = arith.divf %7, %8 : vector<32x1024xf32>
    %c0_6 = arith.constant 0 : index
    %c0_7 = arith.constant 0 : index
    %10 = vector.load %arg4[%c0_6, %c0_7] : memref<32x1024xf32, #tpu.memory_space<vmem>>, vector<32x1024xf32>
    tpu.vector_store %arg4[%c0_6, %c0_7], %9 {strides = array<i32>} : memref<32x1024xf32, #tpu.memory_space<vmem>>, vector<32x1024xf32>,
    return
  }
  func.func @transform_0(%arg0: i32) -> (i32, i32) {
    %c0_i32 = arith.constant 0 : i32
    %c0_i32_0 = arith.constant 0 : i32
    %c0_i32_1 = arith.constant 0 : i32
    return %c0_i32, %c0_i32_0 : i32, i32
  }
  func.func @transform_1(%arg0: i32) -> (i32, i32) {
    %c0_i32 = arith.constant 0 : i32
    %c0_i32_0 = arith.constant 0 : i32
    return %c0_i32, %arg0 : i32, i32
  }
  func.func @transform_2(%arg0: i32) -> (i32, i32) {
    %c0_i32 = arith.constant 0 : i32
    %c0_i32_0 = arith.constant 0 : i32
    %c0_i32_1 = arith.constant 0 : i32
    return %c0_i32, %c0_i32_0 : i32, i32
  }
  func.func @transform_3(%arg0: i32) -> (i32, i32) {
    %c0_i32 = arith.constant 0 : i32
    %c0_i32_0 = arith.constant 0 : i32
    return %c0_i32, %arg0 : i32, i32
  }
}

</mosaic_0001>

<bundles_post_ra>
// kernel: tpu_custom_call.1
= control target key start
LH: loop header
LB: loop body
LE: loop exit
PB: predicated region body
PF: predicated region fallthrough
CT: control target
= control target key end

     0   :  { %8 = vsyncpa [#allocation3], 0  ;;  %s1110_s0 = inlined_call_operand.hbm [shape: f32[32,48], index: 0, kind: input, shape index: {}]   ;;  %s1111_s1 = inlined_call_operand.hbm [shape: f32[48,1024], index: 1, kind: input, shape index: {}]   ;;  %s1112_s2 = inlined_call_operand.hbm [shape: f32[32,1024], index: 2, kind: input, shape index: {}]   ;;  %s1113_s3 = inlined_call_operand.hbm [shape: f32[32,1024], index: 3, kind: output, shape index: {}]  }
   0x1   :  { %9 = vsyncpa [#allocation6], 0 }
   0x2   :  { %10 = vsyncpa [#allocation4], 0  ;;  %s1022_s12 = smov [#allocation5]  }
   0x3   :  { %s28_s13 = sshll.u32 %s1022_s12, 4  ;;  %s29_s13 = int_to_ptr.vmem [resolvable:$true] %s28_s13 }
   0x4   :  { %s944_s14 = scalar_lea.vmem %s29_s13, 6144  ;;  %p949_p1 = scmp.lt.s32.totalorder %s29_s13, %s29_s13 }
   0x5   :  { %p945_p0 = scmp.ne.s32.totalorder %s29_s13, %s944_s14  ;;  %p950_p2 = scmp.lt.s32.totalorder %s944_s14, %s944_s14 }
   0x7   :  { %p951_p3 = por %p950_p2, %p949_p1 }
   0x9   :  { %p952_p4 = pnand %p951_p3, %p945_p0 }
   0xb   :  { %955 = shalt.err (!%p952_p4)
}
   0xc   :  { %s1023_s15 = smov 1024   ;;  %s1024_s16 = smov 64  }
   0xd   :  { %34 = dma.hbm_to_vmem [thread:$0]  %s1111_s1, 6144, %s29_s13, [#allocation6], %s1023_s15, %s1023_s15, %s1024_s16  }
   0xe   :  { %s1025_s19 = smov [#allocation2]  }
   0xf   :  { %s16_s20 = sshll.u32 %s1025_s19, 4  ;;  %s17_s20 = int_to_ptr.vmem [resolvable:$true] %s16_s20 }
  0x10   :  { %s964_s21 = scalar_lea.vmem %s17_s20, 512  ;;  %p969_p6 = scmp.lt.s32.totalorder %s17_s20, %s17_s20 }
  0x11   :  { %p965_p5 = scmp.ne.s32.totalorder %s17_s20, %s964_s21  ;;  %p970_p7 = scmp.lt.s32.totalorder %s964_s21, %s964_s21 }
  0x13   :  { %p971_p8 = por %p970_p7, %p969_p6 }
  0x15   :  { %p972_p9 = pnand %p971_p8, %p965_p5 }
  0x17   :  { %975 = shalt.err (!%p972_p9)
}
  0x18   :  { %s1026_s22 = smov 128   ;;  %s1027_s23 = smov 8  }
  0x19   :  { %22 = dma.hbm_to_vmem [thread:$0]  %s1110_s0, 512, %s17_s20, [#allocation3], %s1026_s22, %s1026_s22, %s1027_s23  }
  0x1a   :  { %s1028_s26 = smov [#allocation7]  }
  0x1b   :  { %s40_s27 = sshll.u32 %s1028_s26, 4  ;;  %s41_s27 = int_to_ptr.vmem [resolvable:$true] %s40_s27 }
  0x1c   :  { %s984_s1 = scalar_lea.vmem %s41_s27, 4096  ;;  %p989_p11 = scmp.lt.s32.totalorder %s41_s27, %s41_s27 }
  0x1d   :  { %p985_p10 = scmp.ne.s32.totalorder %s41_s27, %s984_s1  ;;  %p990_p12 = scmp.lt.s32.totalorder %s984_s1, %s984_s1 }
  0x1f   :  { %p991_p13 = por %p990_p12, %p989_p11 }
  0x21   :  { %p992_p0 = pnand %p991_p13, %p985_p10 }
  0x23   :  { %995 = shalt.err (!%p992_p0)
}
  0x24   :  { %46 = dma.hbm_to_vmem [thread:$0]  %s1112_s2, 4096, %s41_s27, [#allocation6], %s1023_s15, %s1023_s15, %s1024_s16  }
  0x25   :  { %1016 = dma.done.wait [#allocation3], 512  }
  0x26   :  { %1017 = vsyncadd [#allocation3], 4294966784 }
  0x27   :  { %1018 = dma.done.wait [#allocation6], 10240  }
  0x28   :  { %1019 = vsyncadd [#allocation6], 4294957056  ;;  %v1029_v0 = vmov 0.0   ;;  %v101_v1 = vld [vmem:[#allocation5 + $0x148] sm:$0xff]  ;;  %v103_v2 = vld [vmem:[#allocation5 + $0x158] sm:$0xff]  ;;  %vm140_vm0 = vcmask 392192  }
  0x29   :  { %217 = vmatprep.mubr.f32.mxu0 %v1029_v0  ;;  %306 = vmatprep.mubr.f32.mxu1 %v1029_v0  ;;  %v100_v3 = vld [vmem:[#allocation5 + $0x140] sm:$0xff]  ;;  %v102_v4 = vld [vmem:[#allocation5 + $0x150] sm:$0xff]  ;;  %v93_v5 = vld [vmem:[#allocation5 + $0x108] sm:$0xff]  ;;  %s1030_s0 = smov [#allocation8]  }
  0x2a   :  { %173 = vmatprep.subr.mxu0 %v101_v1  ;;  %262 = vmatprep.subr.mxu1 %v103_v2  ;;  %v95_v6 = vld [vmem:[#allocation5 + $0x118] sm:$0xff]  ;;  %v92_v7 = vld [vmem:[#allocation5 + $0x100] sm:$0xff]  ;;  %v94_v8 = vld [vmem:[#allocation5 + $0x110] sm:$0xff]  ;;  %s738_s2 = sshll.u32 %s1030_s0, 4  ;;  %s739_s2 = int_to_ptr.vmem [resolvable:$true] %s738_s2 }
  0x2b   :  { %174 = vmatpush1.msra.mxu0 %v100_v3  ;;  %263 = vmatpush1.msra.mxu1 %v102_v4  ;;  %v85_v9 = vld [vmem:[#allocation5 + $0xc8] sm:$0xff]  ;;  %v87_v10 = vld [vmem:[#allocation5 + $0xd8] sm:$0xff]  ;;  %v84_v11 = vld [vmem:[#allocation5 + $0xc0] sm:$0xff]  ;;  %s996_s30 = scalar_lea.vmem %s739_s2, 4096  ;;  %p1001_p2 = scmp.lt.s32.totalorder %s739_s2, %s739_s2 }
  0x2c   :  { %175 = vmatprep.subr.mxu0 %v93_v5  ;;  %264 = vmatprep.subr.mxu1 %v95_v6  ;;  %v86_v12 = vld [vmem:[#allocation5 + $0xd0] sm:$0xff]  ;;  %v77_v13 = vld [vmem:[#allocation5 + $0x88] sm:$0xff]  ;;  %v79_v14 = vld [vmem:[#allocation5 + $0x98] sm:$0xff]  ;;  %p997_p1 = scmp.ne.s32.totalorder %s739_s2, %s996_s30  ;;  %p1002_p3 = scmp.lt.s32.totalorder %s996_s30, %s996_s30 }
  0x2d   :  { %176 = vmatpush1.msra.mxu0 %v92_v7  ;;  %265 = vmatpush1.msra.mxu1 %v94_v8  ;;  %v76_v15 = vld [vmem:[#allocation5 + $0x80] sm:$0xff]  ;;  %v78_v16 = vld [vmem:[#allocation5 + $0x90] sm:$0xff]  ;;  %v69_v17 = vld [vmem:[#allocation5 + $0x48] sm:$0xff] }
  0x2e   :  { %177 = vmatprep.subr.mxu0 %v85_v9  ;;  %266 = vmatprep.subr.mxu1 %v87_v10  ;;  %v71_v18 = vld [vmem:[#allocation5 + $0x58] sm:$0xff]  ;;  %v68_v19 = vld [vmem:[#allocation5 + $0x40] sm:$0xff]  ;;  %v70_v20 = vld [vmem:[#allocation5 + $0x50] sm:$0xff]  ;;  %p1003_p4 = por %p1002_p3, %p1001_p2 }
  0x2f   :  { %178 = vmatpush1.msra.mxu0 %v84_v11  ;;  %267 = vmatpush1.msra.mxu1 %v86_v12  ;;  %v61_v21 = vld [vmem:[#allocation5 + $0x8] sm:$0xff]  ;;  %v63_v22 = vld [vmem:[#allocation5 + $0x18] sm:$0xff]  ;;  %v60_v23 = vld [vmem:[#allocation5] sm:$0xff] }
  0x30   :  { %179 = vmatprep.subr.mxu0 %v77_v13  ;;  %268 = vmatprep.subr.mxu1 %v79_v14  ;;  %v62_v24 = vld [vmem:[#allocation5 + $0x10] sm:$0xff]  ;;  %v1068_v25 = vld [vmem:[#allocation2] sm:$0xff]  ;;  %v105_v26 = vld [vmem:[#allocation5 + $0x168] sm:$0xff]  ;;  %p1004_p5 = pnand %p1003_p4, %p997_p1 }
  0x31   :  { %180 = vmatpush1.msra.mxu0 %v76_v15  ;;  %269 = vmatpush1.msra.mxu1 %v78_v16  ;;  %v107_v27 = vld [vmem:[#allocation5 + $0x178] sm:$0xff]  ;;  %v104_v28 = vld [vmem:[#allocation5 + $0x160] sm:$0xff]  ;;  %v106_v29 = vld [vmem:[#allocation5 + $0x170] sm:$0xff] }
  0x32   :  { %181 = vmatprep.subr.mxu0 %v69_v17  ;;  %270 = vmatprep.subr.mxu1 %v71_v18  ;;  %v97_v30 = vld [vmem:[#allocation5 + $0x128] sm:$0xff]  ;;  %v99_v31 = vld [vmem:[#allocation5 + $0x138] sm:$0xff]  ;;  %v96_v33 = vld [vmem:[#allocation5 + $0x120] sm:$0xff] }
  0x33   :  { %182 = vmatpush1.msra.mxu0 %v68_v19  ;;  %271 = vmatpush1.msra.mxu1 %v70_v20  ;;  %v57_v32 = vld [vmem:[#allocation2 + $0x8] sm:$0xff]  ;;  %v98_v34 = vld [vmem:[#allocation5 + $0x130] sm:$0xff]  ;;  %v91_v36 = vld [vmem:[#allocation5 + $0xf8] sm:$0xff] }
  0x34   :  { %183 = vmatprep.subr.mxu0 %v61_v21  ;;  %272 = vmatprep.subr.mxu1 %v63_v22  ;;  %v89_v35 = vld [vmem:[#allocation5 + $0xe8] sm:$0xff]  ;;  %v88_v37 = vld [vmem:[#allocation5 + $0xe0] sm:$0xff]  ;;  %v90_v38 = vld [vmem:[#allocation5 + $0xf0] sm:$0xff] }
  0x35   :  { %184 = vmatpush1.msra.mxu0 %v60_v23  ;;  %273 = vmatpush1.msra.mxu1 %v62_v24  ;;  %v58_v39 = vld [vmem:[#allocation2 + $0x10] sm:$0xff]  ;;  %v81_v40 = vld [vmem:[#allocation5 + $0xa8] sm:$0xff]  ;;  %v83_v41 = vld [vmem:[#allocation5 + $0xb8] sm:$0xff] }
  0x36   :  { %751 = vmatmul.mubr.msk.f32.vlgmr.msra.gmra.mxu0 %vm140_vm0, %v1068_v25  ;;  %755 = vmatmul.mubr.msk.f32.vlgmr.msra.gmra.mxu1 %vm140_vm0, %v1068_v25  ;;  %v80_v42 = vld [vmem:[#allocation5 + $0xa0] sm:$0xff]  ;;  %v82_v43 = vld [vmem:[#allocation5 + $0xb0] sm:$0xff]  ;;  %v73_v44 = vld [vmem:[#allocation5 + $0x68] sm:$0xff] }
  0x37   :  { %351 = vmatprep.subr.mxu0 %v105_v26  ;;  %440 = vmatprep.subr.mxu1 %v107_v27  ;;  %v75_v45 = vld [vmem:[#allocation5 + $0x78] sm:$0xff]  ;;  %v72_v47 = vld [vmem:[#allocation5 + $0x60] sm:$0xff]  ;;  %v74_v48 = vld [vmem:[#allocation5 + $0x70] sm:$0xff] }
  0x38   :  { %352 = vmatpush1.msra.mxu0 %v104_v28  ;;  %441 = vmatpush1.msra.mxu1 %v106_v29  ;;  %v59_v46 = vld [vmem:[#allocation2 + $0x18] sm:$0xff]  ;;  %v65_v49 = vld [vmem:[#allocation5 + $0x28] sm:$0xff]  ;;  %v64_v51 = vld [vmem:[#allocation5 + $0x20] sm:$0xff] }
  0x39   :  { %223 = vmatprep.mubr.f32.mxu0 %v1029_v0  ;;  %312 = vmatprep.mubr.f32.mxu1 %v1029_v0  ;;  %v67_v50 = vld [vmem:[#allocation5 + $0x38] sm:$0xff]  ;;  %v66_v52 = vld [vmem:[#allocation5 + $0x30] sm:$0xff]  ;;  %v108_v53 = vld [vmem:[#allocation7] sm:$0xff] }
  0x3a   :  { %353 = vmatprep.subr.mxu0 %v97_v30  ;;  %442 = vmatprep.subr.mxu1 %v99_v31  ;;  %v110_v54 = vld [vmem:[#allocation7 + $0x10] sm:$0xff]  ;;  %v109_v57 = vld [vmem:[#allocation7 + $0x8] sm:$0xff]  ;;  %v111_v58 = vld [vmem:[#allocation7 + $0x18] sm:$0xff] }
  0x3b   :  { %752 = vmatmul.mubr.msk.f32.gmra.mxu0 %vm140_vm0, %v57_v32  ;;  %756 = vmatmul.mubr.msk.f32.gmra.mxu1 %vm140_vm0, %v57_v32  ;;  %v116_v4 = vld [vmem:[#allocation7 + $0x40] sm:$0xff]  ;;  %v117_v9 = vld [vmem:[#allocation7 + $0x48] sm:$0xff]  ;;  %v119_v12 = vld [vmem:[#allocation7 + $0x58] sm:$0xff] }
  0x3c   :  { %354 = vmatpush1.msra.mxu0 %v96_v33  ;;  %443 = vmatpush1.msra.mxu1 %v98_v34  ;;  %v124_v18 = vld [vmem:[#allocation7 + $0x80] sm:$0xff]  ;;  %v126_v19 = vld [vmem:[#allocation7 + $0x90] sm:$0xff]  ;;  %v125_v24 = vld [vmem:[#allocation7 + $0x88] sm:$0xff] }
  0x3d   :  { %355 = vmatprep.subr.mxu0 %v89_v35  ;;  %444 = vmatprep.subr.mxu1 %v91_v36  ;;  %v127_v28 = vld [vmem:[#allocation7 + $0x98] sm:$0xff]  ;;  %v132_v34 = vld [vmem:[#allocation7 + $0xc0] sm:$0xff]  ;;  %v134_v36 = vld [vmem:[#allocation7 + $0xd0] sm:$0xff] }
  0x3e   :  { %229 = vmatprep.mubr.f32.mxu0 %v1029_v0  ;;  %318 = vmatprep.mubr.f32.mxu1 %v1029_v0 }
  0x3f   :  { %356 = vmatpush1.msra.mxu0 %v88_v37  ;;  %445 = vmatpush1.msra.mxu1 %v90_v38 }
  0x40   :  { %753 = vmatmul.mubr.msk.f32.gmra.mxu0 %vm140_vm0, %v58_v39  ;;  %757 = vmatmul.mubr.msk.f32.gmra.mxu1 %vm140_vm0, %v58_v39 }
  0x41   :  { %357 = vmatprep.subr.mxu0 %v81_v40  ;;  %446 = vmatprep.subr.mxu1 %v83_v41 }
  0x42   :  { %358 = vmatpush1.msra.mxu0 %v80_v42  ;;  %447 = vmatpush1.msra.mxu1 %v82_v43 }
  0x43   :  { %235 = vmatprep.mubr.f32.mxu0 %v1029_v0  ;;  %324 = vmatprep.mubr.f32.mxu1 %v1029_v0 }
  0x44   :  { %359 = vmatprep.subr.mxu0 %v73_v44  ;;  %448 = vmatprep.subr.mxu1 %v75_v45 }
  0x45   :  { %754 = vmatmul.mubr.msk.f32.gmra.mxu0 %vm140_vm0, %v59_v46  ;;  %758 = vmatmul.mubr.msk.f32.gmra.mxu1 %vm140_vm0, %v59_v46 }
  0x46   :  { %360 = vmatpush1.msra.mxu0 %v72_v47  ;;  %449 = vmatpush1.msra.mxu1 %v74_v48 }
  0x47   :  { %361 = vmatprep.subr.mxu0 %v65_v49  ;;  %450 = vmatprep.subr.mxu1 %v67_v50  ;;  %v133_v49 = vld [vmem:[#allocation7 + $0xc8] sm:$0xff] }
  0x48   :  { %362 = vmatpush1.msra.mxu0 %v64_v51  ;;  %395 = vmatprep.mubr.f32.mxu0 %v1029_v0 }
  0x49   :  { %451 = vmatpush1.msra.mxu1 %v66_v52  ;;  %484 = vmatprep.mubr.f32.mxu1 %v1029_v0 }
  0x4a   :  { %759 = vmatmul.mubr.msk.f32.vlgmr.msra.gmra.mxu0 %vm140_vm0, %v1068_v25  ;;  %763 = vmatmul.mubr.msk.f32.vlgmr.msra.gmra.mxu1 %vm140_vm0, %v1068_v25 }
  0x4b   :  { %401 = vmatprep.mubr.f32.mxu0 %v1029_v0  ;;  %490 = vmatprep.mubr.f32.mxu1 %v1029_v0 }
  0x4e   :  { %760 = vmatmul.mubr.msk.f32.gmra.mxu0 %vm140_vm0, %v57_v32  ;;  %764 = vmatmul.mubr.msk.f32.gmra.mxu1 %vm140_vm0, %v57_v32 }
  0x4f   :  { %407 = vmatprep.mubr.f32.mxu0 %v1029_v0  ;;  %496 = vmatprep.mubr.f32.mxu1 %v1029_v0 }
  0x52   :  { %761 = vmatmul.mubr.msk.f32.gmra.mxu0 %vm140_vm0, %v58_v39  ;;  %765 = vmatmul.mubr.msk.f32.gmra.mxu1 %vm140_vm0, %v58_v39 }
  0x53   :  { %413 = vmatprep.mubr.f32.mxu0 %v1029_v0  ;;  %502 = vmatprep.mubr.f32.mxu1 %v1029_v0  ;;  %v118_v0 = vld [vmem:[#allocation7 + $0x50] sm:$0xff] }
  0x56   :  { %762 = vmatmul.mubr.msk.f32.gmra.mxu0 %vm140_vm0, %v59_v46  ;;  %766 = vmatmul.mubr.msk.f32.gmra.mxu1 %vm140_vm0, %v59_v46 }
  0xf6   :  { %v219_v55 = vpop.f32.mrf.mxu0  ;;  %v308_v56 = vpop.f32.mrf.mxu1 }
  0xf7   :  { %v220_v59 = vadd.f32 %v219_v55, %v108_v53  ;;  %v309_v60 = vadd.f32 %v308_v56, %v110_v54 }
  0xf8   :  { %v221_v61 = vpop.f32.mrf.mxu0  ;;  %v310_v62 = vpop.f32.mrf.mxu1 }
  0xf9   :  { %v767_v63 = vmul.f32 -1.442695, %v220_v59  ;;  %v769_v1 = vmul.f32 -1.442695, %v309_v60  ;;  %v222_v2 = vadd.f32 %v221_v61, %v109_v57  ;;  %v311_v3 = vadd.f32 %v310_v62, %v111_v58 }
  0xfb   :  { %808 = vpow2.f32 %v767_v63  ;;  %v768_v5 = vmul.f32 -1.442695, %v222_v2  ;;  %v770_v6 = vmul.f32 -1.442695, %v311_v3  ;;  %v225_v7 = vpop.f32.mrf.mxu0  ;;  %v314_v8 = vpop.f32.mrf.mxu1 }
  0xfc   :  { %810 = vpow2.f32 %v769_v1  ;;  %v226_v10 = vadd.f32 %v225_v7, %v116_v4  ;;  %v315_v11 = vadd.f32 %v314_v8, %v118_v0  ;;  %v135_v1 = vld [vmem:[#allocation7 + $0xd8] sm:$0xff]  ;;  %v112_v7 = vld [vmem:[#allocation7 + $0x20] sm:$0xff] }
  0xfd   :  { %812 = vpow2.f32 %v768_v5  ;;  %v227_v13 = vpop.f32.mrf.mxu0  ;;  %v316_v14 = vpop.f32.mrf.mxu1 }
  0xfe   :  { %814 = vpow2.f32 %v770_v6  ;;  %v775_v15 = vmul.f32 -1.442695, %v226_v10  ;;  %v777_v16 = vmul.f32 -1.442695, %v315_v11  ;;  %v228_v17 = vadd.f32 %v227_v13, %v117_v9  ;;  %v114_v10 = vld [vmem:[#allocation7 + $0x30] sm:$0xff]  ;;  %v113_v13 = vld [vmem:[#allocation7 + $0x28] sm:$0xff] }
  0xff   :  { %v317_v20 = vadd.f32 %v316_v14, %v119_v12 }
 0x100   :  { %816 = vpow2.f32 %v775_v15  ;;  %v776_v21 = vmul.f32 -1.442695, %v228_v17  ;;  %v231_v22 = vpop.f32.mrf.mxu0  ;;  %v320_v23 = vpop.f32.mrf.mxu1  ;;  %v115_v17 = vld [vmem:[#allocation7 + $0x38] sm:$0xff] }
 0x101   :  { %818 = vpow2.f32 %v777_v16  ;;  %v778_v25 = vmul.f32 -1.442695, %v317_v20  ;;  %v232_v26 = vadd.f32 %v231_v22, %v124_v18  ;;  %v321_v27 = vadd.f32 %v320_v23, %v126_v19 }
 0x102   :  { %820 = vpow2.f32 %v776_v21  ;;  %v233_v29 = vpop.f32.mrf.mxu0  ;;  %v322_v30 = vpop.f32.mrf.mxu1 }
 0x103   :  { %822 = vpow2.f32 %v778_v25  ;;  %v783_v31 = vmul.f32 -1.442695, %v232_v26  ;;  %v785_v32 = vmul.f32 -1.442695, %v321_v27  ;;  %v234_v33 = vadd.f32 %v233_v29, %v125_v24  ;;  %v120_v26 = vld [vmem:[#allocation7 + $0x60] sm:$0xff] }
 0x104   :  { %v323_v35 = vadd.f32 %v322_v30, %v127_v28  ;;  %v122_v30 = vld [vmem:[#allocation7 + $0x70] sm:$0xff] }
 0x105   :  { %824 = vpow2.f32 %v783_v31  ;;  %v784_v37 = vmul.f32 -1.442695, %v234_v33  ;;  %v237_v38 = vpop.f32.mrf.mxu0  ;;  %v326_v39 = vpop.f32.mrf.mxu1  ;;  %v121_v33 = vld [vmem:[#allocation7 + $0x68] sm:$0xff] }
 0x106   :  { %826 = vpow2.f32 %v785_v32  ;;  %v786_v40 = vmul.f32 -1.442695, %v323_v35  ;;  %v238_v41 = vadd.f32 %v237_v38, %v132_v34  ;;  %v327_v42 = vadd.f32 %v326_v39, %v134_v36  ;;  %v123_v39 = vld [vmem:[#allocation7 + $0x78] sm:$0xff] }
 0x107   :  { %828 = vpow2.f32 %v784_v37  ;;  %v239_v43 = vpop.f32.mrf.mxu0  ;;  %v328_v44 = vpop.f32.mrf.mxu1 }
 0x108   :  { %v809_v45 = vpop.eup %808  ;;  %830 = vpow2.f32 %v786_v40  ;;  %v791_v46 = vmul.f32 -1.442695, %v238_v41  ;;  %v793_v56 = vmul.f32 -1.442695, %v327_v42  ;;  %v240_v58 = vadd.f32 %v239_v43, %v133_v49 }
 0x109   :  { %v811_v47 = vpop.eup %810  ;;  %v605_v48 = vadd.f32 1.0, %v809_v45  ;;  %v329_v9 = vadd.f32 %v328_v44, %v135_v1 }
 0x10a   :  { %v813_v50 = vpop.eup %812  ;;  %v607_v51 = vadd.f32 1.0, %v811_v47  ;;  %832 = vpow2.f32 %v791_v46  ;;  %v397_v52 = vpop.f32.mrf.mxu0  ;;  %v792_v6 = vmul.f32 -1.442695, %v240_v58  ;;  %v128_v47 = vld [vmem:[#allocation7 + $0xa0] sm:$0xff] }
 0x10b   :  { %v486_v53 = vpop.f32.mrf.mxu1  ;;  %v815_v54 = vpop.eup %814  ;;  %834 = vrcp.f32 %v605_v48  ;;  %v606_v55 = vadd.f32 1.0, %v813_v50  ;;  %v398_v16 = vadd.f32 %v397_v52, %v112_v7  ;;  %v794_v24 = vmul.f32 -1.442695, %v329_v9  ;;  %v130_v50 = vld [vmem:[#allocation7 + $0xb0] sm:$0xff] }
 0x10c   :  { %836 = vrcp.f32 %v607_v51  ;;  %v608_v57 = vadd.f32 1.0, %v815_v54  ;;  %v399_v59 = vpop.f32.mrf.mxu0  ;;  %v487_v21 = vadd.f32 %v486_v53, %v114_v10  ;;  %v129_v54 = vld [vmem:[#allocation7 + $0xa8] sm:$0xff] }
 0x10d   :  { %v817_v60 = vpop.eup %816  ;;  %838 = vrcp.f32 %v606_v55  ;;  %v488_v61 = vpop.f32.mrf.mxu1  ;;  %v400_v25 = vadd.f32 %v399_v59, %v113_v13  ;;  %v771_v32 = vmul.f32 -1.442695, %v398_v16  ;;  %v131_v59 = vld [vmem:[#allocation7 + $0xb8] sm:$0xff] }
 0x10e   :  { %v819_v62 = vpop.eup %818  ;;  %840 = vrcp.f32 %v608_v57  ;;  %v613_v63 = vadd.f32 1.0, %v817_v60  ;;  %v403_v4 = vpop.f32.mrf.mxu0  ;;  %v489_v29 = vadd.f32 %v488_v61, %v115_v17  ;;  %v773_v37 = vmul.f32 -1.442695, %v487_v21  ;;  %v138_v17 = vld [vmem:[#allocation7 + $0xf0] sm:$0xff] }
 0x10f   :  { %v821_v2 = vpop.eup %820  ;;  %v615_v3 = vadd.f32 1.0, %v819_v62  ;;  %842 = vpow2.f32 %v793_v56  ;;  %v492_v11 = vpop.f32.mrf.mxu1  ;;  %v404_v38 = vadd.f32 %v403_v4, %v120_v26  ;;  %v772_v41 = vmul.f32 -1.442695, %v400_v25  ;;  %v136_v4 = vld [vmem:[#allocation7 + $0xe0] sm:$0xff] }
 0x110   :  { %v823_v0 = vpop.eup %822  ;;  %844 = vrcp.f32 %v613_v63  ;;  %v614_v5 = vadd.f32 1.0, %v821_v2  ;;  %v405_v18 = vpop.f32.mrf.mxu0  ;;  %v493_v42 = vadd.f32 %v492_v11, %v122_v30  ;;  %v774_v45 = vmul.f32 -1.442695, %v489_v29 }
 0x111   :  { %846 = vrcp.f32 %v615_v3  ;;  %v616_v8 = vadd.f32 1.0, %v823_v0  ;;  %v494_v27 = vpop.f32.mrf.mxu1  ;;  %v406_v46 = vadd.f32 %v405_v18, %v121_v33  ;;  %v779_v53 = vmul.f32 -1.442695, %v404_v38 }
 0x112   :  { %v825_v12 = vpop.eup %824  ;;  %848 = vrcp.f32 %v614_v5  ;;  %v409_v34 = vpop.f32.mrf.mxu0  ;;  %v495_v49 = vadd.f32 %v494_v27, %v123_v39  ;;  %v781_v57 = vmul.f32 -1.442695, %v493_v42 }
 0x113   :  { %v827_v14 = vpop.eup %826  ;;  %850 = vrcp.f32 %v616_v8  ;;  %v621_v15 = vadd.f32 1.0, %v825_v12  ;;  %v498_v43 = vpop.f32.mrf.mxu1  ;;  %v410_v58 = vadd.f32 %v409_v34, %v128_v47  ;;  %v780_v62 = vmul.f32 -1.442695, %v406_v46 }
 0x114   :  { %v829_v19 = vpop.eup %828  ;;  %v623_v20 = vadd.f32 1.0, %v827_v14  ;;  %852 = vpow2.f32 %v792_v6  ;;  %v411_v51 = vpop.f32.mrf.mxu0  ;;  %v499_v63 = vadd.f32 %v498_v43, %v130_v50  ;;  %v782_v2 = vmul.f32 -1.442695, %v495_v49 }
 0x115   :  { %v831_v22 = vpop.eup %830  ;;  %854 = vrcp.f32 %v621_v15  ;;  %v622_v23 = vadd.f32 1.0, %v829_v19  ;;  %v500_v60 = vpop.f32.mrf.mxu1  ;;  %v412_v3 = vadd.f32 %v411_v51, %v129_v54  ;;  %v787_v8 = vmul.f32 -1.442695, %v410_v58 }
 0x116   :  { %856 = vrcp.f32 %v623_v20  ;;  %v624_v28 = vadd.f32 1.0, %v831_v22  ;;  %v415_v0 = vpop.f32.mrf.mxu0  ;;  %v501_v6 = vadd.f32 %v500_v60, %v131_v59  ;;  %v789_v11 = vmul.f32 -1.442695, %v499_v63 }
 0x117   :  { %v833_v31 = vpop.eup %832  ;;  %858 = vrcp.f32 %v622_v23  ;;  %v416_v12 = vadd.f32 %v415_v0, %v136_v4  ;;  %v788_v14 = vmul.f32 -1.442695, %v412_v3  ;;  %v504_v18 = vpop.f32.mrf.mxu1 }
 0x118   :  { %v835_v35 = vpop.eup %834  ;;  %860 = vrcp.f32 %v624_v28  ;;  %v629_v36 = vadd.f32 1.0, %v833_v31  ;;  %v790_v16 = vmul.f32 -1.442695, %v501_v6  ;;  %v137_v28 = vld [vmem:[#allocation7 + $0xe8] sm:$0xff]  ;;  %v417_v29 = vpop.f32.mrf.mxu0 }
 0x119   :  { %v837_v40 = vpop.eup %836  ;;  %701 = vst [vmem:[#allocation8] sm:$0xff] %v835_v35  ;;  %862 = vpow2.f32 %v794_v24  ;;  %v795_v21 = vmul.f32 -1.442695, %v416_v12  ;;  %v505_v24 = vadd.f32 %v504_v18, %v138_v17  ;;  %v506_v42 = vpop.f32.mrf.mxu1 }
 0x11a   :  { %v839_v44 = vpop.eup %838  ;;  %703 = vst [vmem:[#allocation8 + $0x10] sm:$0xff] %v837_v40  ;;  %864 = vrcp.f32 %v629_v36 }
 0x11b   :  { %v841_v48 = vpop.eup %840  ;;  %702 = vst [vmem:[#allocation8 + $0x8] sm:$0xff] %v839_v44  ;;  %866 = vpow2.f32 %v771_v32  ;;  %v797_v34 = vmul.f32 -1.442695, %v505_v24 }
 0x11c   :  { %v843_v52 = vpop.eup %842  ;;  %704 = vst [vmem:[#allocation8 + $0x18] sm:$0xff] %v841_v48  ;;  %868 = vpow2.f32 %v773_v37  ;;  %v418_v37 = vadd.f32 %v417_v29, %v137_v28 }
 0x11d   :  { %v845_v55 = vpop.eup %844  ;;  %v631_v56 = vadd.f32 1.0, %v843_v52  ;;  %870 = vpow2.f32 %v772_v41  ;;  %v139_v41 = vld [vmem:[#allocation7 + $0xf8] sm:$0xff] }
 0x11e   :  { %v847_v61 = vpop.eup %846  ;;  %709 = vst [vmem:[#allocation8 + $0x40] sm:$0xff] %v845_v55  ;;  %872 = vpow2.f32 %v774_v45  ;;  %v796_v47 = vmul.f32 -1.442695, %v418_v37  ;;  %v507_v50 = vadd.f32 %v506_v42, %v139_v41 }
 0x11f   :  { %v849_v1 = vpop.eup %848  ;;  %711 = vst [vmem:[#allocation8 + $0x50] sm:$0xff] %v847_v61  ;;  %874 = vrcp.f32 %v631_v56 }
 0x120   :  { %v851_v5 = vpop.eup %850  ;;  %710 = vst [vmem:[#allocation8 + $0x48] sm:$0xff] %v849_v1  ;;  %876 = vpow2.f32 %v779_v53  ;;  %v798_v58 = vmul.f32 -1.442695, %v507_v50 }
 0x121   :  { %v853_v7 = vpop.eup %852  ;;  %712 = vst [vmem:[#allocation8 + $0x58] sm:$0xff] %v851_v5  ;;  %878 = vpow2.f32 %v781_v57 }
 0x122   :  { %v855_v9 = vpop.eup %854  ;;  %v630_v10 = vadd.f32 1.0, %v853_v7  ;;  %880 = vpow2.f32 %v780_v62 }
 0x123   :  { %v857_v13 = vpop.eup %856  ;;  %717 = vst [vmem:[#allocation8 + $0x80] sm:$0xff] %v855_v9  ;;  %882 = vpow2.f32 %v782_v2 }
 0x124   :  { %v859_v15 = vpop.eup %858  ;;  %719 = vst [vmem:[#allocation8 + $0x90] sm:$0xff] %v857_v13  ;;  %884 = vrcp.f32 %v630_v10 }
 0x125   :  { %v861_v19 = vpop.eup %860  ;;  %718 = vst [vmem:[#allocation8 + $0x88] sm:$0xff] %v859_v15  ;;  %886 = vpow2.f32 %v787_v8 }
 0x126   :  { %v863_v20 = vpop.eup %862  ;;  %720 = vst [vmem:[#allocation8 + $0x98] sm:$0xff] %v861_v19  ;;  %888 = vpow2.f32 %v789_v11 }
 0x127   :  { %v865_v22 = vpop.eup %864  ;;  %v632_v23 = vadd.f32 1.0, %v863_v20  ;;  %890 = vpow2.f32 %v788_v14 }
 0x128   :  { %v867_v25 = vpop.eup %866  ;;  %725 = vst [vmem:[#allocation8 + $0xc0] sm:$0xff] %v865_v22  ;;  %892 = vpow2.f32 %v790_v16 }
 0x129   :  { %v869_v26 = vpop.eup %868  ;;  %894 = vrcp.f32 %v632_v23  ;;  %v609_v27 = vadd.f32 1.0, %v867_v25 }
 0x12a   :  { %v871_v30 = vpop.eup %870  ;;  %v611_v31 = vadd.f32 1.0, %v869_v26  ;;  %896 = vpow2.f32 %v795_v21 }
 0x12b   :  { %v873_v32 = vpop.eup %872  ;;  %898 = vrcp.f32 %v609_v27  ;;  %v610_v33 = vadd.f32 1.0, %v871_v30 }
 0x12c   :  { %v875_v35 = vpop.eup %874  ;;  %900 = vrcp.f32 %v611_v31  ;;  %v612_v36 = vadd.f32 1.0, %v873_v32 }
 0x12d   :  { %v877_v38 = vpop.eup %876  ;;  %727 = vst [vmem:[#allocation8 + $0xd0] sm:$0xff] %v875_v35  ;;  %902 = vrcp.f32 %v610_v33 }
 0x12e   :  { %v879_v39 = vpop.eup %878  ;;  %904 = vrcp.f32 %v612_v36  ;;  %v617_v40 = vadd.f32 1.0, %v877_v38 }
 0x12f   :  { %v881_v43 = vpop.eup %880  ;;  %v619_v44 = vadd.f32 1.0, %v879_v39  ;;  %906 = vpow2.f32 %v797_v34 }
 0x130   :  { %v883_v45 = vpop.eup %882  ;;  %908 = vrcp.f32 %v617_v40  ;;  %v618_v46 = vadd.f32 1.0, %v881_v43 }
 0x131   :  { %v885_v48 = vpop.eup %884  ;;  %910 = vrcp.f32 %v619_v44  ;;  %v620_v49 = vadd.f32 1.0, %v883_v45 }
 0x132   :  { %v887_v51 = vpop.eup %886  ;;  %726 = vst [vmem:[#allocation8 + $0xc8] sm:$0xff] %v885_v48  ;;  %912 = vrcp.f32 %v618_v46 }
 0x133   :  { %v889_v52 = vpop.eup %888  ;;  %914 = vrcp.f32 %v620_v49  ;;  %v625_v53 = vadd.f32 1.0, %v887_v51 }
 0x134   :  { %v891_v54 = vpop.eup %890  ;;  %v627_v55 = vadd.f32 1.0, %v889_v52  ;;  %916 = vpow2.f32 %v796_v47 }
 0x135   :  { %v893_v56 = vpop.eup %892  ;;  %918 = vrcp.f32 %v625_v53  ;;  %v626_v57 = vadd.f32 1.0, %v891_v54 }
 0x136   :  { %v895_v59 = vpop.eup %894  ;;  %920 = vrcp.f32 %v627_v55  ;;  %v628_v60 = vadd.f32 1.0, %v893_v56 }
 0x137   :  { %v897_v61 = vpop.eup %896  ;;  %728 = vst [vmem:[#allocation8 + $0xd8] sm:$0xff] %v895_v59  ;;  %922 = vrcp.f32 %v626_v57 }
 0x138   :  { %v899_v62 = vpop.eup %898  ;;  %924 = vrcp.f32 %v628_v60  ;;  %v633_v63 = vadd.f32 1.0, %v897_v61 }
 0x139   :  { %v901_v1 = vpop.eup %900  ;;  %705 = vst [vmem:[#allocation8 + $0x20] sm:$0xff] %v899_v62  ;;  %926 = vpow2.f32 %v798_v58 }
 0x13a   :  { %v903_v2 = vpop.eup %902  ;;  %707 = vst [vmem:[#allocation8 + $0x30] sm:$0xff] %v901_v1  ;;  %928 = vrcp.f32 %v633_v63 }
 0x13b   :  { %v905_v3 = vpop.eup %904  ;;  %706 = vst [vmem:[#allocation8 + $0x28] sm:$0xff] %v903_v2 }
 0x13c   :  { %v907_v4 = vpop.eup %906  ;;  %708 = vst [vmem:[#allocation8 + $0x38] sm:$0xff] %v905_v3 }
 0x13d   :  { %v909_v0 = vpop.eup %908  ;;  %v635_v5 = vadd.f32 1.0, %v907_v4 }
 0x13e   :  { %v911_v6 = vpop.eup %910  ;;  %713 = vst [vmem:[#allocation8 + $0x60] sm:$0xff] %v909_v0 }
 0x13f   :  { %v913_v7 = vpop.eup %912  ;;  %715 = vst [vmem:[#allocation8 + $0x70] sm:$0xff] %v911_v6  ;;  %930 = vrcp.f32 %v635_v5 }
 0x140   :  { %v915_v8 = vpop.eup %914  ;;  %714 = vst [vmem:[#allocation8 + $0x68] sm:$0xff] %v913_v7 }
 0x141   :  { %v917_v9 = vpop.eup %916  ;;  %716 = vst [vmem:[#allocation8 + $0x78] sm:$0xff] %v915_v8 }
 0x142   :  { %v919_v10 = vpop.eup %918  ;;  %v634_v11 = vadd.f32 1.0, %v917_v9 }
 0x143   :  { %v921_v12 = vpop.eup %920  ;;  %721 = vst [vmem:[#allocation8 + $0xa0] sm:$0xff] %v919_v10 }
 0x144   :  { %v923_v13 = vpop.eup %922  ;;  %723 = vst [vmem:[#allocation8 + $0xb0] sm:$0xff] %v921_v12  ;;  %932 = vrcp.f32 %v634_v11 }
 0x145   :  { %v925_v14 = vpop.eup %924  ;;  %722 = vst [vmem:[#allocation8 + $0xa8] sm:$0xff] %v923_v13 }
 0x146   :  { %v927_v15 = vpop.eup %926  ;;  %724 = vst [vmem:[#allocation8 + $0xb8] sm:$0xff] %v925_v14 }
 0x147   :  { %v929_v16 = vpop.eup %928  ;;  %v636_v17 = vadd.f32 1.0, %v927_v15 }
 0x148   :  { %729 = vst [vmem:[#allocation8 + $0xe0] sm:$0xff] %v929_v16 }
 0x149   :  { %934 = vrcp.f32 %v636_v17 }
 0x14c   :  { %v931_v18 = vpop.eup %930 }
 0x14d   :  { %731 = vst [vmem:[#allocation8 + $0xf0] sm:$0xff] %v931_v18 }
 0x151   :  { %v933_v19 = vpop.eup %932 }
 0x152   :  { %730 = vst [vmem:[#allocation8 + $0xe8] sm:$0xff] %v933_v19 }
 0x156   :  { %v935_v20 = vpop.eup %934 }
 0x157   :  { %732 = vst [vmem:[#allocation8 + $0xf8] sm:$0xff] %v935_v20 }
 0x158   :  { %1007 = shalt.err (!%p1004_p5)
}
 0x159   :  { %744 = dma.vmem_to_hbm [thread:$0]  %s739_s2, 4096, %s1113_s3, [#allocation4], %s1023_s15, %s1023_s15, %s1024_s16  }
 0x15a   :  { %1020 = dma.done.wait [#allocation4], 4096  }
 0x15b   :  { %1021 = vsyncadd [#allocation4], 4294963200 }
 0x15c   :  { %748 = vsyncpa [#allocation3], 1 }
 0x15d   :  { %749 = vsyncpa [#allocation6], 1 }
 0x15e   :  { %750 = vsyncpa [#allocation4], 1 }

</bundles_post_ra>
